<compile_context>
chip_gen: v6e
topology: v6e:2x2x1
jax: 0.10.0
libtpu: 0.0.40
codegen_flags: <defaults>
</compile_context>

<pallas_src>
import functools

import numpy as np

import jax
import jax.numpy as jnp
from jax import lax
from jax.experimental import pallas as pl
from jax.experimental.pallas import tpu as pltpu


# dot_general dimension numbers (both validated to lower cleanly previously)
TN_DIMS = (((0,), (0,)), ((), ()))   # contract dim 0 of both  (lhs transposed)
NT_DIMS = (((1,), (1,)), ((), ()))   # contract dim 1 of both  (rhs transposed)


def _up8(x):
    return ((x + 7) // 8) * 8


def _slab_layout(window_size, n_features):
    """Static row offsets (8-aligned) of each constant inside the packed slab."""
    ws, nf = window_size, n_features
    r = ws // nf
    offs = {}
    cur = 0
    offs["wgat"] = cur;  cur += _up8(ws)     # (ws, ws)   GAT linear weight
    offs["asrc"] = cur;  cur += 8            # (1, ws)    att_src
    offs["adst"] = cur;  cur += 8            # (1, ws)    att_dst
    offs["bgat"] = cur;  cur += 8            # (1, ws)    GAT bias
    offs["mask"] = cur;  cur += _up8(nf)     # (nf, nf)   additive softmax mask
    offs["wgcnT"] = cur; cur += _up8(nf)     # (nf, nf)   GCN weight, transposed
    offs["bgcn"] = cur;  cur += _up8(nf)     # (nf, nf)   GCN bias as row-constant matrix
    offs["aT"] = cur                          # r blocks of (ws, nf): (Adjn[k::r,:])^T
    a_stride = _up8(ws)
    cur += r * a_stride
    rows = _up8(cur)
    width = max(ws, nf)
    return offs, a_stride, rows, width


# ----------------------------------------------------------------------------
# Fused per-sample kernel: feature GAT -> ReLU -> temporal GCN -> ReLU
# with the final view/permute folded into the epilogue.
# ----------------------------------------------------------------------------
def _stgat_kernel(const_ref, data_ref, o_ref, *, ws, nf, r, offs, a_stride):
    """One grid step = one batch sample.

    const_ref : (R, W)    packed constants (see _slab_layout)
    data_ref  : (ws, nf)  raw input sample data[s]
    o_ref     : (ws, nf)  final module output for sample s (view+permute folded)
    """
    f32 = jnp.float32

    # -------- unpack constants (static slices, zero-cost views of VMEM) ------
    wgat = const_ref[offs["wgat"]:offs["wgat"] + ws, 0:ws]        # (ws, ws)
    asrc = const_ref[offs["asrc"]:offs["asrc"] + 1, 0:ws]         # (1, ws)
    adst = const_ref[offs["adst"]:offs["adst"] + 1, 0:ws]         # (1, ws)
    bgat = const_ref[offs["bgat"]:offs["bgat"] + 1, 0:ws]         # (1, ws)
    mask = const_ref[offs["mask"]:offs["mask"] + nf, 0:nf]        # (nf, nf)
    wgcnT = const_ref[offs["wgcnT"]:offs["wgcnT"] + nf, 0:nf]     # (nf, nf)
    bgcn_mat = const_ref[offs["bgcn"]:offs["bgcn"] + nf, 0:nf]    # (nf, nf), row j == bgcn[j]

    # -------- feature GAT (nodes = features, node feats = window) ------------
    # h = data[s].T @ Wgat, with the transpose folded into a TN contraction.
    h = lax.dot_general(data_ref[...], wgat, TN_DIMS,
                        preferred_element_type=f32)               # (nf, ws)

    a_dst = jnp.sum(h * adst, axis=-1, keepdims=True)             # (nf, 1)  VPU+XLU
    a_src = lax.dot_general(asrc, h, NT_DIMS,
                            preferred_element_type=f32)           # (1, nf)  lane-major row
    e = a_dst + a_src                                             # (nf, nf)
    e = jnp.where(e > 0, e, 0.2 * e)                              # LeakyReLU(0.2)
    e = e + mask                                                  # 0 / -1e30 edge mask
    e = e - jnp.max(e, axis=-1, keepdims=True)
    p = jnp.exp(e)
    inv_den = pl.reciprocal(jnp.sum(p, axis=-1, keepdims=True), approx=True)
    alpha = p * inv_den                                           # softmax over sources
    f = jnp.dot(alpha, h, preferred_element_type=f32) + bgat
    f = jnp.maximum(f, 0.0)                                       # (nf, ws)

    # -------- temporal GCN in transposed space + folded view/permute ---------
    # hz = (f.T) @ Wgcn  ==>  M = hz.T = Wgcn.T @ f   (no relayout of f needed)
    m = jnp.dot(wgcnT, f, preferred_element_type=f32)             # (nf, ws)
    # Final module output rows [k*nf:(k+1)*nf] == relu(M @ Adjn[k::r,:].T + bgcn_j),
    # which is exactly t_out.view(nf, ws).permute(1, 0) of the reference.
    for k in range(r):
        a0 = offs["aT"] + k * a_stride
        akT = const_ref[a0:a0 + ws, 0:nf]                         # (ws, nf)
        blk = jnp.dot(m, akT, preferred_element_type=f32) + bgcn_mat
        o_ref[k * nf:(k + 1) * nf, :] = jnp.maximum(blk, 0.0)     # (nf, nf) block


def _stgat_pallas(data, const_slab, *, batch, window_size, n_features):
    b, ws, nf = batch, window_size, n_features
    offs, a_stride, rows, width = _slab_layout(ws, nf)
    assert const_slab.shape == (rows, width)
    kernel = functools.partial(_stgat_kernel, ws=ws, nf=nf, r=ws // nf,
                               offs=offs, a_stride=a_stride)
    return pl.pallas_call(
        kernel,
        out_shape=jax.ShapeDtypeStruct((b, ws, nf), jnp.float32),
        grid=(b,),
        in_specs=[
            pl.BlockSpec((rows, width), lambda s: (0, 0)),        # shared constant slab
            pl.BlockSpec((None, ws, nf), lambda s: (s, 0, 0)),    # per-sample data
        ],
        out_specs=pl.BlockSpec((None, ws, nf), lambda s: (s, 0, 0)),
        compiler_params=pltpu.CompilerParams(dimension_semantics=("parallel",)),
    )(const_slab, data)


@jax.jit
def stgat_block_forward(data, const_slab):
    """data: (batch, window_size, n_features) -> (batch, window_size, n_features)."""
    b, ws, nf = data.shape
    return _stgat_pallas(data.astype(jnp.float32), const_slab,
                         batch=b, window_size=ws, n_features=nf)


# ----------------------------------------------------------------------------
# One-time host-side constant packing (numpy; never on the per-call hot path).
# ----------------------------------------------------------------------------
def build_const_slab(params, fc_edge_index, tc_edge_index, window_size, n_features):
    ws, nf = window_size, n_features
    # TODO(synk): the in-kernel view/permute fold assumes window_size % n_features == 0
    # (true for this model family); otherwise fall back to a wrapper-side reshape.
    assert ws % nf == 0, "kernel epilogue fold requires window_size % n_features == 0"
    r = ws // nf
    offs, a_stride, rows, width = _slab_layout(ws, nf)
    slab = np.zeros((rows, width), np.float32)

    # feature graph adjacency (adj[target, source] = 1, + self loops) -> additive mask
    fc = np.asarray(fc_edge_index)
    adj_f = np.zeros((nf, nf), np.float32)
    adj_f[fc[1], fc[0]] = 1.0
    np.fill_diagonal(adj_f, 1.0)
    mask = np.where(adj_f > 0, 0.0, -1e30).astype(np.float32)

    # temporal graph: symmetric-normalized adjacency D^-1/2 (A+I) D^-1/2
    tc = np.asarray(tc_edge_index)
    adj_t = np.zeros((ws, ws), np.float32)
    adj_t[tc[1], tc[0]] = 1.0
    np.fill_diagonal(adj_t, 1.0)
    dinv = 1.0 / np.sqrt(adj_t.sum(-1, keepdims=True))
    adjn = (dinv * adj_t * dinv.T).astype(np.float32)             # (ws, ws)

    slab[offs["wgat"]:offs["wgat"] + ws, :ws] = np.asarray(params["gat_w"])
    slab[offs["asrc"], :ws] = np.asarray(params["gat_att_src"]).reshape(ws)
    slab[offs["adst"], :ws] = np.asarray(params["gat_att_dst"]).reshape(ws)
    slab[offs["bgat"], :ws] = np.asarray(params["gat_bias"]).reshape(ws)
    slab[offs["mask"]:offs["mask"] + nf, :nf] = mask
    slab[offs["wgcnT"]:offs["wgcnT"] + nf, :nf] = np.asarray(params["gcn_w"]).T
    bg = np.asarray(params["gcn_bias"]).reshape(nf)
    slab[offs["bgcn"]:offs["bgcn"] + nf, :nf] = np.tile(bg[:, None], (1, nf))
    for k in range(r):
        a0 = offs["aT"] + k * a_stride
        slab[a0:a0 + ws, :nf] = adjn[k::r, :].T                   # (ws, nf)
    return jnp.asarray(slab)


def init_stgat_params(key, n_features, window_size):
    ks = jax.random.split(key, 6)
    scale = 0.1
    return {
        # feature GAT: GATConv(window_size, window_size), heads=1
        "gat_w": scale * jax.random.normal(ks[0], (window_size, window_size), jnp.float32),
        "gat_att_src": scale * jax.random.normal(ks[1], (1, window_size), jnp.float32),
        "gat_att_dst": scale * jax.random.normal(ks[2], (1, window_size), jnp.float32),
        "gat_bias": scale * jax.random.normal(ks[3], (1, window_size), jnp.float32),
        # temporal GCN: GCNConv(n_features, n_features)
        "gcn_w": scale * jax.random.normal(ks[4], (n_features, n_features), jnp.float32),
        "gcn_bias": scale * jax.random.normal(ks[5], (1, n_features), jnp.float32),
    }


# ----------------------------------------------------------------------------
# Plain-JAX reference (same math, no Pallas) for a sanity check
# ----------------------------------------------------------------------------
def _edge_index_to_dense_adj(edge_index, num_nodes):
    src = edge_index[0]
    tgt = edge_index[1]
    adj = jnp.zeros((num_nodes, num_nodes), jnp.float32).at[tgt, src].set(1.0)
    idx = jnp.arange(num_nodes)
    return adj.at[idx, idx].set(1.0)


def _reference_forward(data, fc_edge_index, tc_edge_index, params):
    b, ws, nf = data.shape
    x = jnp.transpose(data, (0, 2, 1)).astype(jnp.float32)              # (b, nf, ws)
    adj_f = _edge_index_to_dense_adj(fc_edge_index, nf)
    adj_t = _edge_index_to_dense_adj(tc_edge_index, ws)

    h = jnp.einsum("bnw,wk->bnk", x, params["gat_w"], precision="highest")
    a_d = jnp.einsum("bnk,ok->bno", h, params["gat_att_dst"], precision="highest")
    a_s = jnp.einsum("bnk,ok->bon", h, params["gat_att_src"], precision="highest")
    e = a_d + a_s
    e = jnp.where(e > 0, e, 0.2 * e)
    e = jnp.where(adj_f[None] > 0, e, -1e30)
    alpha = jax.nn.softmax(e, axis=-1)
    f_out = jnp.einsum("bij,bjk->bik", alpha, h, precision="highest") + params["gat_bias"]
    f_out = jnp.maximum(f_out, 0.0)

    z = jnp.transpose(f_out, (0, 2, 1))                                  # (b, ws, nf)
    hz = jnp.einsum("bwn,nm->bwm", z, params["gcn_w"], precision="highest")
    deg = jnp.sum(adj_t, axis=-1, keepdims=True)
    dinv = 1.0 / jnp.sqrt(deg)
    agg = jnp.einsum("ij,bjm->bim", adj_t, dinv[None] * hz, precision="highest")
    t_out = jnp.maximum(dinv[None] * agg + params["gcn_bias"], 0.0)

    t_view = jnp.reshape(t_out, (b, nf, ws))
    return jnp.transpose(t_view, (0, 2, 1))


def _fully_connected_edge_index(num_nodes):
    """All directed edges i != j (self-loops added inside the conv), PyG style."""
    src, tgt = [], []
    for j in range(num_nodes):
        for i in range(num_nodes):
            if i != j:
                src.append(j)
                tgt.append(i)
    return jnp.array([src, tgt], dtype=jnp.int32)


if __name__ == "__main__":
    batch, window_size, n_features = 2, 16, 8

    key = jax.random.PRNGKey(0)
    k_data, k_params = jax.random.split(key)
    data = jax.random.normal(k_data, (batch, window_size, n_features), jnp.float32)

    fc_edge_index = _fully_connected_edge_index(n_features)    # feature graph
    tc_edge_index = _fully_connected_edge_index(window_size)   # temporal graph

    params = init_stgat_params(k_params, n_features, window_size)

    # Constants are packed ONCE (host-side numpy), never rebuilt per call.
    const_slab = build_const_slab(params, fc_edge_index, tc_edge_index,
                                  window_size, n_features)

    out = stgat_block_forward(data, const_slab)
    out = jax.block_until_ready(out)

    ref = _reference_forward(data, fc_edge_index, tc_edge_index, params)
    assert out.shape == (batch, window_size, n_features)
    assert jnp.allclose(out, ref, rtol=1e-2, atol=1e-2), "Pallas output mismatch vs reference"

    print("KERNEL_OK")
</pallas_src>

<mosaic_0001>
module attributes {stable_mosaic.version = 11 : i64} {
  func.func @_stgat_kernel(%arg0: i32, %arg1: memref<96x16xf32, #tpu.memory_space<vmem>>, %arg2: memref<1x16x8xf32, #tpu.memory_space<vmem>>, %arg3: memref<1x16x8xf32, #tpu.memory_space<vmem>>) attributes {dimension_semantics = [#tpu.dimension_semantics<parallel>], iteration_bounds = array<i64: 2>, scalar_prefetch = 0 : i64, scratch_operands = 0 : i64, tpu.core_type = #tpu.core_type<tc>, window_params = [{pipeline_mode = #tpu.pipeline_mode<synchronous>, transform_indices = @transform_0, window_bounds = array<i64: 96, 16>}, {transform_indices = @transform_1, window_bounds = array<i64: 1, 16, 8>}, {transform_indices = @transform_2, window_bounds = array<i64: 1, 16, 8>}]} {
    %c0 = arith.constant 0 : index
    %c0_0 = arith.constant 0 : index
    %0 = vector.load %arg1[%c0, %c0_0] : memref<96x16xf32, #tpu.memory_space<vmem>>, vector<16x16xf32>
    %c16 = arith.constant 16 : index
    %c0_1 = arith.constant 0 : index
    %1 = vector.load %arg1[%c16, %c0_1] : memref<96x16xf32, #tpu.memory_space<vmem>>, vector<1x16xf32>
    %c24 = arith.constant 24 : index
    %c0_2 = arith.constant 0 : index
    %2 = vector.load %arg1[%c24, %c0_2] : memref<96x16xf32, #tpu.memory_space<vmem>>, vector<1x16xf32>
    %c32 = arith.constant 32 : index
    %c0_3 = arith.constant 0 : index
    %3 = vector.load %arg1[%c32, %c0_3] : memref<96x16xf32, #tpu.memory_space<vmem>>, vector<1x16xf32>
    %c40 = arith.constant 40 : index
    %c0_4 = arith.constant 0 : index
    %4 = vector.load %arg1[%c40, %c0_4] : memref<96x16xf32, #tpu.memory_space<vmem>>, vector<8x8xf32>
    %c48 = arith.constant 48 : index
    %c0_5 = arith.constant 0 : index
    %5 = vector.load %arg1[%c48, %c0_5] : memref<96x16xf32, #tpu.memory_space<vmem>>, vector<8x8xf32>
    %c56 = arith.constant 56 : index
    %c0_6 = arith.constant 0 : index
    %6 = vector.load %arg1[%c56, %c0_6] : memref<96x16xf32, #tpu.memory_space<vmem>>, vector<8x8xf32>
    %c0_7 = arith.constant 0 : index
    %c0_8 = arith.constant 0 : index
    %c0_9 = arith.constant 0 : index
    %7 = vector.load %arg2[%c0_7, %c0_8, %c0_9] : memref<1x16x8xf32, #tpu.memory_space<vmem>>, vector<1x16x8xf32>
    %8 = vector.shape_cast %7 : vector<1x16x8xf32> to vector<16x8xf32>
    %cst = arith.constant dense<0.000000e+00> : vector<8x16xf32>
    %9 = tpu.matmul %8, %0, %cst {dimension_numbers = #tpu.dot_dimension_numbers<[0], [0], [1], [1], [0, 1, 1, 1], [], []>} : vector<16x8xf32>, vector<16x16xf32>, vector<8x16xf32> -> vector<8x16xf32>
    %10 = vector.broadcast %2 : vector<1x16xf32> to vector<8x16xf32>
    %11 = arith.mulf %9, %10 : vector<8x16xf32>
    %cst_10 = arith.constant dense<0.000000e+00> : vector<8xf32>
    %12 = vector.multi_reduction <add>, %11, %cst_10 [1] : vector<8x16xf32> to vector<8xf32>
    %13 = vector.shape_cast %12 : vector<8xf32> to vector<8x1xf32>
    %cst_11 = arith.constant dense<0.000000e+00> : vector<1x8xf32>
    %14 = tpu.matmul %1, %9, %cst_11 {dimension_numbers = #tpu.dot_dimension_numbers<[1], [1], [0], [0], [0, 0, 1, 0], [], []>} : vector<1x16xf32>, vector<8x16xf32>, vector<1x8xf32> -> vector<1x8xf32>
    %15 = vector.broadcast %13 : vector<8x1xf32> to vector<8x8xf32>
    %16 = vector.broadcast %14 : vector<1x8xf32> to vector<8x8xf32>
    %17 = arith.addf %15, %16 : vector<8x8xf32>
    %cst_12 = arith.constant 0.000000e+00 : f32
    %18 = vector.broadcast %cst_12 : f32 to vector<8x8xf32>
    %19 = arith.cmpf ogt, %17, %18 : vector<8x8xf32>
    %cst_13 = arith.constant 2.000000e-01 : f32
    %20 = vector.broadcast %cst_13 : f32 to vector<8x8xf32>
    %21 = arith.mulf %20, %17 : vector<8x8xf32>
    %22 = arith.select %19, %17, %21 : vector<8x8xi1>, vector<8x8xf32>
    %23 = arith.addf %22, %4 : vector<8x8xf32>
    %cst_14 = arith.constant dense<0xFF800000> : vector<8xf32>
    %24 = vector.multi_reduction <maximumf>, %23, %cst_14 [1] : vector<8x8xf32> to vector<8xf32>
    %25 = vector.shape_cast %24 : vector<8xf32> to vector<8x1xf32>
    %26 = vector.broadcast %25 : vector<8x1xf32> to vector<8x8xf32>
    %27 = arith.subf %23, %26 : vector<8x8xf32>
    %28 = math.exp %27 : vector<8x8xf32>
    %cst_15 = arith.constant dense<0.000000e+00> : vector<8xf32>
    %29 = vector.multi_reduction <add>, %28, %cst_15 [1] : vector<8x8xf32> to vector<8xf32>
    %30 = vector.shape_cast %29 : vector<8xf32> to vector<8x1xf32>
    %31 = tpu.reciprocal %30 {approx = true} : vector<8x1xf32> -> vector<8x1xf32>
    %32 = vector.broadcast %31 : vector<8x1xf32> to vector<8x8xf32>
    %33 = arith.mulf %28, %32 : vector<8x8xf32>
    %cst_16 = arith.constant dense<0.000000e+00> : vector<8x16xf32>
    %34 = tpu.matmul %33, %9, %cst_16 {dimension_numbers = #tpu.dot_dimension_numbers<[1], [0], [0], [1], [0, 0, 1, 1], [], []>} : vector<8x8xf32>, vector<8x16xf32>, vector<8x16xf32> -> vector<8x16xf32>
    %35 = vector.broadcast %3 : vector<1x16xf32> to vector<8x16xf32>
    %36 = arith.addf %34, %35 : vector<8x16xf32>
    %cst_17 = arith.constant 0.000000e+00 : f32
    %37 = vector.broadcast %cst_17 : f32 to vector<8x16xf32>
    %38 = arith.maximumf %36, %37 : vector<8x16xf32>
    %cst_18 = arith.constant dense<0.000000e+00> : vector<8x16xf32>
    %39 = tpu.matmul %5, %38, %cst_18 {dimension_numbers = #tpu.dot_dimension_numbers<[1], [0], [0], [1], [0, 0, 1, 1], [], []>} : vector<8x8xf32>, vector<8x16xf32>, vector<8x16xf32> -> vector<8x16xf32>
    %c64 = arith.constant 64 : index
    %c0_19 = arith.constant 0 : index
    %40 = vector.load %arg1[%c64, %c0_19] : memref<96x16xf32, #tpu.memory_space<vmem>>, vector<16x8xf32>
    %cst_20 = arith.constant dense<0.000000e+00> : vector<8x8xf32>
    %41 = tpu.matmul %39, %40, %cst_20 {dimension_numbers = #tpu.dot_dimension_numbers<[1], [0], [0], [1], [0, 0, 1, 1], [], []>} : vector<8x16xf32>, vector<16x8xf32>, vector<8x8xf32> -> vector<8x8xf32>
    %42 = arith.addf %41, %6 : vector<8x8xf32>
    %cst_21 = arith.constant 0.000000e+00 : f32
    %43 = vector.broadcast %cst_21 : f32 to vector<8x8xf32>
    %44 = arith.maximumf %42, %43 : vector<8x8xf32>
    %c0_22 = arith.constant 0 : index
    %c0_23 = arith.constant 0 : index
    %c0_24 = arith.constant 0 : index
    %45 = vector.load %arg3[%c0_22, %c0_23, %c0_24] : memref<1x16x8xf32, #tpu.memory_space<vmem>>, vector<1x8x8xf32>
    %46 = vector.shape_cast %45 : vector<1x8x8xf32> to vector<8x8xf32>
    %47 = vector.shape_cast %44 : vector<8x8xf32> to vector<1x8x8xf32>
    tpu.vector_store %arg3[%c0_22, %c0_23, %c0_24], %47 {strides = array<i32>} : memref<1x16x8xf32, #tpu.memory_space<vmem>>, vector<1x8x8xf32>,
    %c80 = arith.constant 80 : index
    %c0_25 = arith.constant 0 : index
    %48 = vector.load %arg1[%c80, %c0_25] : memref<96x16xf32, #tpu.memory_space<vmem>>, vector<16x8xf32>
    %cst_26 = arith.constant dense<0.000000e+00> : vector<8x8xf32>
    %49 = tpu.matmul %39, %48, %cst_26 {dimension_numbers = #tpu.dot_dimension_numbers<[1], [0], [0], [1], [0, 0, 1, 1], [], []>} : vector<8x16xf32>, vector<16x8xf32>, vector<8x8xf32> -> vector<8x8xf32>
    %50 = arith.addf %49, %6 : vector<8x8xf32>
    %cst_27 = arith.constant 0.000000e+00 : f32
    %51 = vector.broadcast %cst_27 : f32 to vector<8x8xf32>
    %52 = arith.maximumf %50, %51 : vector<8x8xf32>
    %c0_28 = arith.constant 0 : index
    %c8 = arith.constant 8 : index
    %c0_29 = arith.constant 0 : index
    %53 = vector.load %arg3[%c0_28, %c8, %c0_29] : memref<1x16x8xf32, #tpu.memory_space<vmem>>, vector<1x8x8xf32>
    %54 = vector.shape_cast %53 : vector<1x8x8xf32> to vector<8x8xf32>
    %55 = vector.shape_cast %52 : vector<8x8xf32> to vector<1x8x8xf32>
    tpu.vector_store %arg3[%c0_28, %c8, %c0_29], %55 {strides = array<i32>} : memref<1x16x8xf32, #tpu.memory_space<vmem>>, vector<1x8x8xf32>,
    return
  }
  func.func @transform_0(%arg0: i32) -> (i32, i32) {
    %c0_i32 = arith.constant 0 : i32
    %c0_i32_0 = arith.constant 0 : i32
    %c0_i32_1 = arith.constant 0 : i32
    return %c0_i32, %c0_i32_0 : i32, i32
  }
  func.func @transform_1(%arg0: i32) -> (i32, i32, i32) {
    %c0_i32 = arith.constant 0 : i32
    %c0_i32_0 = arith.constant 0 : i32
    %c0_i32_1 = arith.constant 0 : i32
    return %arg0, %c0_i32, %c0_i32_0 : i32, i32, i32
  }
  func.func @transform_2(%arg0: i32) -> (i32, i32, i32) {
    %c0_i32 = arith.constant 0 : i32
    %c0_i32_0 = arith.constant 0 : i32
    %c0_i32_1 = arith.constant 0 : i32
    return %arg0, %c0_i32, %c0_i32_0 : i32, i32, i32
  }
}

</mosaic_0001>

<bundles_post_ra>
// kernel: stgat_block_forward.1
= control target key start
LH: loop header
LB: loop body
LE: loop exit
PB: predicated region body
PF: predicated region fallthrough
CT: control target
= control target key end

     0   :  { %s834_s9 = smov 0   ;;  %s927_s0 = inlined_call_operand.vmem [shape: f32[96,16], index: 0, kind: input, shape index: {}]   ;;  %s928_s1 = inlined_call_operand.vmem [shape: f32[2,16,8], index: 1, kind: input, shape index: {}]   ;;  %s929_s2 = inlined_call_operand.vmem [shape: f32[2,16,8], index: 2, kind: output, shape index: {}]  }
   0x1 LB: > { %s722_s10 = sadd.s32 4294967295, %s815_s9   ;;  %p726_p0 = scmp.ge.s32.totalorder %s815_s9, 1  ;;  %s815_s9 = sphi %s834_s9, %s12_s9  }
   0x2   : > { %p112_p1 = scmp.lt.s32.totalorder %s815_s9, 3 }
   0x4   : > { %p113_p2 = pnand %p726_p0, %p112_p1 }
   0x5   : > { %p134_p3 = scmp.lt.s32.totalorder (!%p113_p2), %s722_s10, 1 }
   0x6   : > { %116 = sbr.rel (%p113_p2) target bundleno = 1439 (0x59f), region = 28 }
   0xb   : > { %v145_v0 = vld [vmem:[%s927_s0 + $0x8] sm:$0xff]  ;;  %v817_v1 = vmov 0.0   ;;  %v144_v2 = vld [vmem:[%s927_s0] sm:$0xff]  ;;  %vm818_vm0 = vmmov 0   ;;  %s931_s10 = smov (!%p134_p3, %s722_s10), 1  ;;  %vm186_vm1 = vcmask 130048   ;;  %v344_v12 = vlaneseq }
   0xc   : > { %759 = vmatprep.subr.mxu0 %v817_v1  ;;  %763 = vmatprep.mubr.msk.f32.mxu0 %vm818_vm0, %v817_v1  ;;  %s742_s15 = sshll.u32 %s931_s10, 4  ;;  %v732_v6 = vld [vmem:[%s927_s0 + $0x18] ss:$0 sm:$0xff]  ;;  %v146_v8 = vld [vmem:[%s927_s0 + $0x10] sm:$0x1]  ;;  %v149_v21 = vld [vmem:[%s927_s0 + $0x28] sm:$0xff] }
   0xd   : > { %760 = vmatpush3.msra.mxu0 %v145_v0  ;;  %766 = vmatprep.subr.mxu1 %v817_v1  ;;  %s138_s18 = scalar_lea.vmem %s928_s1, %s742_s15  ;;  %v345_v13 = vshrl.u32 %v344_v12, 7  ;;  %vm353_vm3 = vcmask 64512   ;;  %v517_v33 = vld [vmem:[%s927_s0 + $0x48] sm:$0xff]  ;;  %v735_v34 = vld [vmem:[%s927_s0 + $0x20] ss:$0 sm:$0xff]  ;;  %v150_v39 = vld [vmem:[%s927_s0 + $0x30] sm:$0xff]  ;;  %s143_s16 = scalar_lea.vmem %s929_s2, %s742_s15 }
   0xe   : > { %761 = vmatprep.subr.mxu0 %v817_v1  ;;  %768 = vmatprep.mubr.msk.f32.mxu1 %vm818_vm0, %v817_v1  ;;  %v152_v3 = vld [vmem:[%s138_s18] sm:$0xff]  ;;  %v153_v4 = vld [vmem:[%s138_s18 + $0x8] sm:$0xff]  ;;  %v594_v40 = vld [vmem:[%s927_s0 + $0x58] sm:$0xff] }
   0xf   : > { %762 = vmatpush3.msra.mxu0 %v144_v2  ;;  %154 = vxpose.xlu0.b32.start [1/2] (short) (narrow) %v152_v3, 8  ;;  %v346_v14 = vsub.s32 0, %v345_v13  ;;  %v516_v41 = vld [vmem:[%s927_s0 + $0x40] sm:$0xff]  ;;  %v593_v42 = vld [vmem:[%s927_s0 + $0x50] sm:$0xff]  ;;  %v151_v45 = vld [vmem:[%s927_s0 + $0x38] sm:$0xff] }
  0x10   : > { %771 = vmatprep.subr.mxu0 %v817_v1 }
  0x13   : > { %155 = vxpose.xlu0.b32.end [2/2] (short) (narrow) %v153_v4, 8 }
  0x8b   : > { %v170_v5 = vpop.trf.xlu0 }
  0x8c   : > { %764 = vmatmul.mubr.msk.f32.vlgmr.msra.gmra.mxu0 %vm186_vm1, %v170_v5 }
  0x8d   : > { %773 = vmatprep.mubr.msk.f32.mxu0 %vm818_vm0, %v817_v1 }
 0x14c   : > { %v256_v7 = vpop.f32.mrf.mxu0 }
 0x14d   : > { %767 = vmatpush3.xpose.msk.msra.mxu1 %vm186_vm1, %v256_v7  ;;  %772 = vmatpush3.msra.mxu0 %v256_v7  ;;  %v264_v9 = vmul.f32 %v732_v6, %v256_v7 }
 0x14e   : > { %v765_v10 = vpop.f32.mrf.mxu0  ;;  %776 = vmatprep.subr.mxu1 %v817_v1  ;;  %781 = vmatprep.subr.mxu0 %v817_v1 }
 0x14f   : > { %v265_v11 = vsel %vm186_vm1, %v264_v9, 0.0 }
 0x150   : > { %769 = vmatmul.mubr.msk.f32.vlgmr.msra.gmra.mxu1 %vm186_vm1, %v146_v8  ;;  %266 = vadd.xlane.f32.xlu1 %v265_v11 }
 0x151   : > { %778 = vmatprep.mubr.msk.f32.mxu1 %vm818_vm0, %v817_v1 }
 0x1d9   : > { %v267_v17 = vpop.xlane.xlu1 %266 }
 0x210   : > { %v340_v15 = vpop.f32.mrf.mxu1 }
 0x211   : > { %v347_v16 = vrot.slane %v340_v15, %v346_v14 }
 0x212   : > { %v770_v18 = vpop.f32.mrf.mxu1 }
 0x213   : > { %v348_v19 = vadd.f32 %v347_v16, %v267_v17 }
 0x215   : > { %v350_v20 = vmul.f32 0.2, %v348_v19  ;;  %vm349_vm2 = vcmp.gt.f32.partialorder %v348_v19, 0.0 }
 0x217   : > { %v351_v22 = vsel %vm349_vm2, %v348_v19, %v350_v20 }
 0x218   : > { %v352_v23 = vadd.f32 %v351_v22, %v149_v21 }
 0x21a   : > { %v354_v24 = vsel %vm353_vm3, %v352_v23, -inf }
 0x21b   : > { %355 = vmax.xlane.f32.xlu1 %v354_v24 }
 0x2a4   : > { %v356_v25 = vpop.xlane.xlu1 %355 }
 0x2a5   : > { %v357_v26 = vsub.f32 %v352_v23, %v356_v25 }
 0x2a7   : > { %v358_v27 = vmul.f32 1.442695, %v357_v26 }
 0x2a9   : > { %805 = vpow2.f32 %v358_v27 }
 0x2b6   : > { %v806_v28 = vpop.eup %805 }
 0x2b7   : > { %v360_v29 = vsel %vm353_vm3, %v806_v28, 0.0 }
 0x2b8   : > { %361 = vadd.xlane.f32.xlu0 %v360_v29 }
 0x341   : > { %v362_v30 = vpop.xlane.xlu0 %361 }
 0x342   : > { %807 = vrcp.f32 %v362_v30 }
 0x34f   : > { %v808_v31 = vpop.eup %807 }
 0x350   : > { %v364_v32 = vmul.f32 %v808_v31, %v806_v28 }
 0x352   : > { %774 = vmatmul.mubr.msk.f32.vlgmr.msra.gmra.mxu0 %vm353_vm3, %v364_v32 }
 0x353   : > { %785 = vmatprep.mubr.msk.f32.mxu0 %vm818_vm0, %v817_v1  ;;  %782 = vmatpush3.msra.mxu0 %v517_v33 }
 0x354   : > { %783 = vmatprep.subr.mxu0 %v817_v1 }
 0x355   : > { %784 = vmatpush3.msra.mxu0 %v516_v41 }
 0x412   : > { %v438_v35 = vpop.f32.mrf.mxu0 }
 0x413   : > { %v439_v36 = vadd.f32 %v735_v34, %v438_v35 }
 0x414   : > { %v775_v37 = vpop.f32.mrf.mxu0 }
 0x415   : > { %v442_v38 = vmax.f32 %v439_v36, 0.0 }
 0x417   : > { %777 = vmatpush3.msra.mxu1 %v442_v38 }
 0x418   : > { %779 = vmatmul.mubr.msk.f32.vlgmr.msra.gmra.mxu1 %vm353_vm3, %v150_v39  ;;  %788 = vmatprep.subr.mxu1 %v817_v1 }
 0x419   : > { %789 = vmatpush3.msra.mxu1 %v594_v40  ;;  %792 = vmatprep.mubr.msk.f32.mxu1 %vm818_vm0, %v817_v1 }
 0x41a   : > { %790 = vmatprep.subr.mxu1 %v817_v1 }
 0x41b   : > { %791 = vmatpush3.msra.mxu1 %v593_v42 }
 0x4d8   : > { %v512_v43 = vpop.f32.mrf.mxu1 }
 0x4d9   : > { %786 = vmatmul.mubr.msk.f32.vlgmr.msra.gmra.mxu0 %vm186_vm1, %v512_v43  ;;  %793 = vmatmul.mubr.msk.f32.vlgmr.msra.gmra.mxu1 %vm186_vm1, %v512_v43 }
 0x4da   : > { %v780_v44 = vpop.f32.mrf.mxu1 }
 0x599   : > { %v587_v46 = vpop.f32.mrf.mxu0  ;;  %v661_v47 = vpop.f32.mrf.mxu1 }
 0x59a   : > { %v588_v48 = vadd.f32 %v587_v46, %v151_v45  ;;  %v662_v49 = vadd.f32 %v661_v47, %v151_v45 }
 0x59b   : > { %v787_v50 = vpop.f32.mrf.mxu0  ;;  %v794_v51 = vpop.f32.mrf.mxu1 }
 0x59c   : > { %v591_v52 = vmax.f32 %v588_v48, 0.0  ;;  %v665_v53 = vmax.f32 %v662_v49, 0.0 }
 0x59e   : > { %592 = vst.msk [vmem:[%s143_s16] sm:$0xff] %vm353_vm3, %v591_v52  ;;  %666 = vst.msk [vmem:[%s143_s16 + $0x8] sm:$0xff] %vm353_vm3, %v665_v53 }
 0x59f PF: > { %s12_s9 = sadd.s32 1, %s815_s9  }
 0x5a0   : > { %p9_p4 = scmp.ge.s32.totalorder %s12_s9, 4  }
 0x5a2   :  { %11 = sbr.rel (!%p9_p4) target bundleno = 1 (0x1), region = 58 }

</bundles_post_ra>
